<compile_context>
chip_gen: v7x
topology: tpu7x:2x2x1
jax: 0.10.0
libtpu: 0.0.40
codegen_flags: <defaults>
</compile_context>

<pallas_src>
import jax
import jax.numpy as jnp
from jax.experimental import pallas as pl
from jax.experimental.pallas import tpu as pltpu


def _policy_kernel(x_ref, w_ref, b_ref, out_ref):
    # x_ref  : [TILE_B, obs_dim]     batch rows on sublanes, features on lanes
    # w_ref  : [action_dim, obs_dim] native nn.Linear layout (no host-side transpose)
    # b_ref  : [action_dim, 1]
    # out_ref: [action_dim, TILE_B]  lane-dense: batch on the 128-lane axis
    logits = jax.lax.dot_general(
        w_ref[...],
        x_ref[...],
        dimension_numbers=(((1,), (1,)), ((), ())),  # contract obs_dim on both (NT matmul)
        preferred_element_type=jnp.float32,
    )                                                # [action_dim, TILE_B] on the MXU
    logits = logits + b_ref[...]                     # lane-broadcast bias add (VPU)

    # Numerically stable softmax over the action dim (sublane axis -> XLU reduce,
    # which is a free slot here; exp goes to the EUP).
    m = jnp.max(logits, axis=0, keepdims=True)       # [1, TILE_B]
    e = jnp.exp(logits - m)
    denom = jnp.sum(e, axis=0, keepdims=True)        # [1, TILE_B]
    out_ref[...] = (e * pl.reciprocal(denom, approx=True)).astype(out_ref.dtype)


def simple_policy_forward(x, weight, bias_col, *, tile_b=8192):
    """softmax(x @ weight.T + bias, axis=1) as one fused Pallas TPU kernel.

    x        : [B, obs_dim]           f32 (or bf16 together with weight on v6e/v7x)
    weight   : [action_dim, obs_dim]  native nn.Linear layout, used as-is
    bias_col : [action_dim, 1]        pre-shaped once at parameter init
    returns  : [B, action_dim] float32 probabilities (PyTorch layout)
    """
    B, obs_dim = x.shape
    action_dim = weight.shape[0]

    # Batch tile: large tiles amortize the ~0.35us per-grid-step overhead on this
    # mem-bound op; rows are only `obs_dim` features wide, so thousands of rows per
    # tile still fit comfortably in scoped VMEM with double-buffering.
    tile_b = min(tile_b, B)
    if tile_b < B:
        # Tiled path: the batch tile becomes the lane axis of the output block,
        # so keep it a multiple of 128 (also a multiple of 8 for the x sublane axis).
        tile_b = max(128, (tile_b // 128) * 128)
    num_tiles = pl.cdiv(B, tile_b)
    b_pad = num_tiles * tile_b
    if b_pad != B:
        # Zero rows -> finite (bias-only) softmax in the padding, sliced off below.
        x = jnp.pad(x, ((0, b_pad - B), (0, 0)))

    in_bytes = jnp.dtype(x.dtype).itemsize
    cost = pl.CostEstimate(
        flops=2 * b_pad * obs_dim * action_dim + 6 * b_pad * action_dim,
        transcendentals=b_pad * action_dim + b_pad,
        bytes_accessed=(
            b_pad * obs_dim * in_bytes            # x read
            + action_dim * obs_dim * in_bytes     # weight read
            + action_dim * 4                      # bias read
            + b_pad * action_dim * 4              # probs write
        ),
    )

    probs_t = pl.pallas_call(
        _policy_kernel,
        out_shape=jax.ShapeDtypeStruct((action_dim, b_pad), jnp.float32),
        grid=(num_tiles,),
        in_specs=[
            pl.BlockSpec((tile_b, obs_dim), lambda i: (i, 0)),        # x: tiled over batch
            pl.BlockSpec((action_dim, obs_dim), lambda i: (0, 0)),    # weight: resident
            pl.BlockSpec((action_dim, 1), lambda i: (0, 0)),          # bias: resident
        ],
        out_specs=pl.BlockSpec((action_dim, tile_b), lambda i: (0, i)),
        compiler_params=pltpu.CompilerParams(
            dimension_semantics=("parallel",),  # shard batch tiles across TCs (v7x megacore)
        ),
        cost_estimate=cost,
    )(x, weight, bias_col)

    # Back to the PyTorch [B, action_dim] layout (cheap: output is the small tensor).
    return probs_t[:, :B].T


def init_simple_policy_params(key, obs_dim, action_dim):
    """Xavier-uniform weight (nn.Linear layout) + default nn.Linear bias init.

    Returns weight [action_dim, obs_dim] (consumed as-is by the kernel — no transpose
    anywhere on the hot path) and bias pre-shaped [action_dim, 1].
    """
    k_w, k_b = jax.random.split(key)
    limit = float(jnp.sqrt(6.0 / (obs_dim + action_dim)))
    weight = jax.random.uniform(
        k_w, (action_dim, obs_dim), minval=-limit, maxval=limit, dtype=jnp.float32
    )
    b_limit = float(1.0 / jnp.sqrt(jnp.float32(obs_dim)))
    bias_col = jax.random.uniform(
        k_b, (action_dim, 1), minval=-b_limit, maxval=b_limit, dtype=jnp.float32
    )
    return weight, bias_col


# TODO(synk): select_action's Categorical sampling / log_prob is host-side control
# logic (torch.distributions) and is intentionally left outside the Pallas kernel.


if __name__ == "__main__":
    key = jax.random.PRNGKey(0)
    k_x, k_p, k_x2 = jax.random.split(key, 3)

    obs_dim, action_dim = 32, 8
    weight, bias_col = init_simple_policy_params(k_p, obs_dim, action_dim)

    # Small shape consistent with the module's typical RL usage.
    batch = 2
    x = jax.random.normal(k_x, (batch, obs_dim), dtype=jnp.float32)
    probs = jax.block_until_ready(simple_policy_forward(x, weight, bias_col))

    ref = jax.nn.softmax(x @ weight.T + bias_col[:, 0], axis=1)
    assert probs.shape == (batch, action_dim)
    # Tolerance covers the approximate EUP reciprocal (exact softmax would be <1e-6).
    assert bool(jnp.allclose(jnp.sum(probs, axis=1), 1.0, atol=5e-3))
    assert bool(jnp.allclose(probs, ref, atol=5e-3))

    # Exercise the tiled / ragged-batch path (multi-tile grid + zero padding).
    batch2 = 300
    x2 = jax.random.normal(k_x2, (batch2, obs_dim), dtype=jnp.float32)
    probs2 = jax.block_until_ready(
        simple_policy_forward(x2, weight, bias_col, tile_b=128)
    )
    ref2 = jax.nn.softmax(x2 @ weight.T + bias_col[:, 0], axis=1)
    assert probs2.shape == (batch2, action_dim)
    assert bool(jnp.allclose(probs2, ref2, atol=5e-3))

    print("KERNEL_OK")
</pallas_src>

<mosaic_0001>
module attributes {stable_mosaic.version = 11 : i64} {
  func.func @_policy_kernel(%arg0: i32, %arg1: memref<2x32xf32, #tpu.memory_space<vmem>>, %arg2: memref<8x32xf32, #tpu.memory_space<vmem>>, %arg3: memref<8x1xf32, #tpu.memory_space<vmem>>, %arg4: memref<8x2xf32, #tpu.memory_space<vmem>>) attributes {dimension_semantics = [#tpu.dimension_semantics<parallel>], iteration_bounds = array<i64: 1>, scalar_prefetch = 0 : i64, scratch_operands = 0 : i64, tpu.core_type = #tpu.core_type<tc>, window_params = [{transform_indices = @transform_0, window_bounds = array<i64: 2, 32>}, {pipeline_mode = #tpu.pipeline_mode<synchronous>, transform_indices = @transform_1, window_bounds = array<i64: 8, 32>}, {pipeline_mode = #tpu.pipeline_mode<synchronous>, transform_indices = @transform_2, window_bounds = array<i64: 8, 1>}, {transform_indices = @transform_3, window_bounds = array<i64: 8, 2>}]} {
    %c0 = arith.constant 0 : index
    %c0_0 = arith.constant 0 : index
    %0 = vector.load %arg2[%c0, %c0_0] : memref<8x32xf32, #tpu.memory_space<vmem>>, vector<8x32xf32>
    %c0_1 = arith.constant 0 : index
    %c0_2 = arith.constant 0 : index
    %1 = vector.load %arg1[%c0_1, %c0_2] : memref<2x32xf32, #tpu.memory_space<vmem>>, vector<2x32xf32>
    %cst = arith.constant dense<0.000000e+00> : vector<8x2xf32>
    %2 = tpu.matmul %0, %1, %cst {dimension_numbers = #tpu.dot_dimension_numbers<[1], [1], [0], [0], [0, 0, 1, 0], [], []>} : vector<8x32xf32>, vector<2x32xf32>, vector<8x2xf32> -> vector<8x2xf32>
    %c0_3 = arith.constant 0 : index
    %c0_4 = arith.constant 0 : index
    %3 = vector.load %arg3[%c0_3, %c0_4] : memref<8x1xf32, #tpu.memory_space<vmem>>, vector<8x1xf32>
    %4 = vector.broadcast %3 : vector<8x1xf32> to vector<8x2xf32>
    %5 = arith.addf %2, %4 : vector<8x2xf32>
    %cst_5 = arith.constant dense<0xFF800000> : vector<2xf32>
    %6 = vector.multi_reduction <maximumf>, %5, %cst_5 [0] : vector<8x2xf32> to vector<2xf32>
    %7 = vector.shape_cast %6 : vector<2xf32> to vector<1x2xf32>
    %8 = vector.broadcast %7 : vector<1x2xf32> to vector<8x2xf32>
    %9 = arith.subf %5, %8 : vector<8x2xf32>
    %10 = math.exp %9 : vector<8x2xf32>
    %cst_6 = arith.constant dense<0.000000e+00> : vector<2xf32>
    %11 = vector.multi_reduction <add>, %10, %cst_6 [0] : vector<8x2xf32> to vector<2xf32>
    %12 = vector.shape_cast %11 : vector<2xf32> to vector<1x2xf32>
    %13 = tpu.reciprocal %12 {approx = true} : vector<1x2xf32> -> vector<1x2xf32>
    %14 = vector.broadcast %13 : vector<1x2xf32> to vector<8x2xf32>
    %15 = arith.mulf %10, %14 : vector<8x2xf32>
    %c0_7 = arith.constant 0 : index
    %c0_8 = arith.constant 0 : index
    %16 = vector.load %arg4[%c0_7, %c0_8] : memref<8x2xf32, #tpu.memory_space<vmem>>, vector<8x2xf32>
    tpu.vector_store %arg4[%c0_7, %c0_8], %15 {strides = array<i32>} : memref<8x2xf32, #tpu.memory_space<vmem>>, vector<8x2xf32>,
    return
  }
  func.func @transform_0(%arg0: i32) -> (i32, i32) {
    %c0_i32 = arith.constant 0 : i32
    %c0_i32_0 = arith.constant 0 : i32
    return %arg0, %c0_i32 : i32, i32
  }
  func.func @transform_1(%arg0: i32) -> (i32, i32) {
    %c0_i32 = arith.constant 0 : i32
    %c0_i32_0 = arith.constant 0 : i32
    %c0_i32_1 = arith.constant 0 : i32
    return %c0_i32, %c0_i32_0 : i32, i32
  }
  func.func @transform_2(%arg0: i32) -> (i32, i32) {
    %c0_i32 = arith.constant 0 : i32
    %c0_i32_0 = arith.constant 0 : i32
    %c0_i32_1 = arith.constant 0 : i32
    return %c0_i32, %c0_i32_0 : i32, i32
  }
  func.func @transform_3(%arg0: i32) -> (i32, i32) {
    %c0_i32 = arith.constant 0 : i32
    %c0_i32_0 = arith.constant 0 : i32
    return %c0_i32, %arg0 : i32, i32
  }
}

</mosaic_0001>

<bundles_post_ra>
// kernel: tpu_custom_call.1
= control target key start
LH: loop header
LB: loop body
LE: loop exit
PB: predicated region body
PF: predicated region fallthrough
CT: control target
= control target key end

     0   :  { %vm22_vm0 = vcmask 261120   ;;  %v141_v0 = vmov 0.0   ;;  %vm142_vm1 = vmmov 0   ;;  %v143_v4 = vmov 0   ;;  %s179_s0 = inlined_call_operand.vmem [shape: f32[2,32], index: 0, kind: input, shape index: {}]   ;;  %s180_s1 = inlined_call_operand.vmem [shape: f32[8,32], index: 1, kind: input, shape index: {}]   ;;  %s181_s2 = inlined_call_operand.vmem [shape: f32[8,1], index: 2, kind: input, shape index: {}]   ;;  %s182_s3 = inlined_call_operand.vmem [shape: f32[8,2], index: 3, kind: output, shape index: {}]  }
   0x1   :  { %128 = vmatprep.subr.mxu0 %v141_v0  ;;  %v15_v1 = vld [vmem:[%s179_s0] sm:$0x3]  ;;  %130 = vmatprep.mubr.msk.f32.mxu0 %vm142_vm1, %v141_v0  ;;  %vm99_vm2 = vcmask 15360  }
   0x2   :  { %v16_v2 = vld [vmem:[%s181_s2] sm:$0xff]  ;;  %129 = vmatpush3.xpose.msk.msra.mxu0 %vm22_vm0, %v15_v1  ;;  %136 = vset.pattern.permute.xlu0 %v143_v4 }
   0x3   :  { %v14_v3 = vld [vmem:[%s180_s1] sm:$0xff]  ;;  %19 = vperm.xlu0 %136, %v16_v2  }
   0x5   :  { %131 = vmatmul.mubr.msk.f32.vlgmr.msra.gmra.mrb[0].mxu0 %vm22_vm0, %v14_v3 }
  0x82   :  { %v20_v5 = vpop.permute.xlu0 %19 }
  0xd8   :  { %v95_v6 = vpop.f32.mrb[0].mxu0 }
  0xd9   :  { %v96_v7 = vadd.f32 %v95_v6, %v20_v5  ;;  %v132_v8 = vpop.f32.mrb[1].mxu0 }
  0xdb   :  { %v100_v9 = vsel %vm99_vm2, %v96_v7, -inf }
  0xdc   :  { %v101_v10 = vrot.slane %v100_v9, 4 }
  0xde   :  { %v102_v11 = vmax.f32 %v100_v9, %v101_v10 }
  0xe0   :  { %v103_v12 = vrot.slane %v102_v11, 2 }
  0xe2   :  { %v104_v13 = vmax.f32 %v102_v11, %v103_v12 }
  0xe4   :  { %v105_v14 = vrot.slane %v104_v13, 1 }
  0xe6   :  { %v106_v15 = vmax.f32 %v104_v13, %v105_v14 }
  0xe8   :  { %v107_v16 = vsub.f32 %v96_v7, %v106_v15 }
  0xea   :  { %v108_v17 = vmul.f32 1.442695, %v107_v16 }
  0xec   :  { %137 = vpow2.f32 %v108_v17 }
  0xf6   :  { %v138_v18 = vpop.eup %137 }
  0xf7   :  { %v110_v19 = vsel %vm99_vm2, %v138_v18, 0.0 }
  0xf8   :  { %v111_v20 = vrot.slane %v110_v19, 4 }
  0xfa   :  { %v112_v21 = vadd.f32 %v111_v20, %v110_v19 }
  0xfc   :  { %v113_v22 = vrot.slane %v112_v21, 2 }
  0xfe   :  { %v114_v23 = vadd.f32 %v113_v22, %v112_v21 }
 0x100   :  { %v115_v24 = vrot.slane %v114_v23, 1 }
 0x102   :  { %v116_v25 = vadd.f32 %v115_v24, %v114_v23 }
 0x104   :  { %139 = vrcp.f32 %v116_v25 }
 0x10e   :  { %v140_v26 = vpop.eup %139 }
 0x10f   :  { %v118_v27 = vmul.f32 %v140_v26, %v138_v18 }
 0x111   :  { %119 = vst.msk [vmem:[%s182_s3] sm:$0xff] %vm99_vm2, %v118_v27 }

</bundles_post_ra>
